<compile_context>
chip_gen: v6e
topology: v6e:2x2x1
jax: 0.10.0
libtpu: 0.0.40
codegen_flags: <defaults>
</compile_context>

<pallas_src>
import jax
import jax.numpy as jnp
from jax.experimental import pallas as pl
from jax.experimental.pallas import tpu as pltpu


def _round_up(x, m):
    return ((x + m - 1) // m) * m


def offset_predictor_kernel(x_ref, w_in_ref, b_in_ref, wr_ref, br_ref,
                            wo_ref, bo_ref, out_ref):
    # Feature-major: x_ref is [d_in, Tc] (tokens on lanes).
    x = x_ref[...]

    # Fused input projection:  h = [Wp | Wf] @ [pos; feat]^T + (bp + bf)
    h = jnp.dot(w_in_ref[...], x.astype(w_in_ref.dtype),
                preferred_element_type=jnp.float32) + b_in_ref[...]

    # res_block(h) == ReLU(Wr @ h + br)   (single Linear+ReLU, see note above)
    res = jnp.maximum(
        jnp.dot(wr_ref[...], h.astype(wr_ref.dtype),
                preferred_element_type=jnp.float32) + br_ref[...],
        0.0,
    )

    # out = ReLU(h + res_block(h))
    out = jnp.maximum(h + res, 0.0)

    # pos_offset = Wo @ out + bo    -> lane-dense [out_pos_dim, Tc] store
    y = jnp.dot(wo_ref[...], out.astype(wo_ref.dtype),
                preferred_element_type=jnp.float32) + bo_ref[...]
    out_ref[...] = y.astype(out_ref.dtype)


def offset_predictor(pos, feat, params, *, block_cols=1024):
    """pos: [N, pos_dim], feat: [N, feat_dim] -> [N, out_pos_dim]."""
    N, pos_dim = pos.shape
    _, feat_dim = feat.shape
    # Params in native PyTorch layout: W [out, in], b [out, 1].
    wp, bp, wf, bf, wr, br, wo, bo = params
    H = wp.shape[0]
    out_pos_dim = wo.shape[0]
    d_in = pos_dim + feat_dim

    # Fuse the two input projections (one matmul, one bias).
    w_in = jnp.concatenate([wp, wf], axis=1)                    # [H, d_in]
    b_in = bp.astype(jnp.float32) + bf.astype(jnp.float32)      # [H, 1]
    br_f = br.astype(jnp.float32)
    bo_f = bo.astype(jnp.float32)

    # Feature-major layout: tokens on the lane axis.
    x = jnp.concatenate([pos, feat], axis=1).T                  # [d_in, N]

    # Bounded lane tile (multiple of 128); pad ragged N.
    block_cols = max(128, min(block_cols, _round_up(N, 128)))
    n_pad = _round_up(N, block_cols)
    if n_pad != N:
        x = jnp.pad(x, ((0, 0), (0, n_pad - N)))
    grid = (n_pad // block_cols,)

    full = lambda a: pl.BlockSpec(a.shape, lambda i: (0, 0))

    flops = 2 * n_pad * (d_in * H + H * H + H * out_pos_dim)
    bytes_accessed = 4 * (n_pad * (d_in + out_pos_dim)
                          + w_in.size + wr.size + wo.size + 3 * H)

    y = pl.pallas_call(
        offset_predictor_kernel,
        out_shape=jax.ShapeDtypeStruct((out_pos_dim, n_pad), pos.dtype),
        grid_spec=pltpu.PrefetchScalarGridSpec(
            num_scalar_prefetch=0,
            grid=grid,
            in_specs=[
                pl.BlockSpec((d_in, block_cols), lambda i: (0, i)),  # x^T tile
                full(w_in), full(b_in),
                full(wr), full(br_f),
                full(wo), full(bo_f),
            ],
            out_specs=pl.BlockSpec((out_pos_dim, block_cols), lambda i: (0, i)),
        ),
        compiler_params=pltpu.CompilerParams(
            dimension_semantics=("parallel",),
            vmem_limit_bytes=32 * 1024 * 1024,
        ),
        cost_estimate=pl.CostEstimate(
            flops=flops, transcendentals=0, bytes_accessed=bytes_accessed),
    )(x, w_in, b_in, wr, br_f, wo, bo_f)

    return y[:, :N].T                                            # [N, out_pos_dim]


def init_params(key, pos_dim, feat_dim, hidden_size, out_pos_dim,
                dtype=jnp.float32):
    """PyTorch-style uniform(-1/sqrt(fan_in), 1/sqrt(fan_in)) init.

    Weights stored in PyTorch layout [out_features, in_features], biases as
    [out_features, 1].  Use dtype=jnp.bfloat16 on v6e/v7x for bf16 MXU feeds.
    """
    def linear(k, fan_in, fan_out):
        kw, kb = jax.random.split(k)
        bound = 1.0 / jnp.sqrt(fan_in)
        w = jax.random.uniform(kw, (fan_out, fan_in), jnp.float32, -bound, bound)
        b = jax.random.uniform(kb, (fan_out, 1), jnp.float32, -bound, bound)
        return w.astype(dtype), b.astype(dtype)

    k1, k2, k3, k4 = jax.random.split(key, 4)
    wp, bp = linear(k1, pos_dim, hidden_size)
    wf, bf = linear(k2, feat_dim, hidden_size)
    wr, br = linear(k3, hidden_size, hidden_size)   # the surviving res_block linear
    wo, bo = linear(k4, hidden_size, out_pos_dim)
    return (wp, bp, wf, bf, wr, br, wo, bo)


def reference(pos, feat, params):
    wp, bp, wf, bf, wr, br, wo, bo = [a.astype(jnp.float32) for a in params]
    x = pos @ wp.T + bp[:, 0] + feat @ wf.T + bf[:, 0]
    res = jnp.maximum(x @ wr.T + br[:, 0], 0.0)
    out = jnp.maximum(x + res, 0.0)
    return out @ wo.T + bo[:, 0]


if __name__ == "__main__":
    key = jax.random.PRNGKey(0)
    k_pos, k_feat, k_params, k_pos2, k_feat2 = jax.random.split(key, 5)

    pos_dim, feat_dim, hidden, out_pos_dim = 4, 16, 32, 4
    params = init_params(k_params, pos_dim, feat_dim, hidden, out_pos_dim)

    # Jitted entry point: preprocessing (concat / transpose / pad) fuses with
    # the pallas_call dispatch into one compiled program.
    run = jax.jit(offset_predictor, static_argnames=("block_cols",))

    # Small case (N=8, single padded tile).
    N = 8
    pos = jax.random.normal(k_pos, (N, pos_dim), jnp.float32)
    feat = jax.random.normal(k_feat, (N, feat_dim), jnp.float32)
    out = jax.block_until_ready(run(pos, feat, params))
    ref = reference(pos, feat, params)
    assert out.shape == (N, out_pos_dim)
    assert jnp.allclose(out, ref, atol=1e-5, rtol=1e-5), "mismatch vs reference (small)"

    # Ragged / multi-tile case (exercises padding + multi-step pipelined grid).
    N2 = 300
    pos2 = jax.random.normal(k_pos2, (N2, pos_dim), jnp.float32)
    feat2 = jax.random.normal(k_feat2, (N2, feat_dim), jnp.float32)
    out2 = jax.block_until_ready(run(pos2, feat2, params, block_cols=128))
    ref2 = reference(pos2, feat2, params)
    assert out2.shape == (N2, out_pos_dim)
    assert jnp.allclose(out2, ref2, atol=1e-5, rtol=1e-5), "mismatch vs reference (ragged)"

    print("KERNEL_OK")
</pallas_src>

<mosaic_0001>
module attributes {stable_mosaic.version = 11 : i64} {
  func.func @offset_predictor_kernel(%arg0: i32, %arg1: memref<20x128xf32, #tpu.memory_space<vmem>>, %arg2: memref<32x20xf32, #tpu.memory_space<vmem>>, %arg3: memref<32x1xf32, #tpu.memory_space<vmem>>, %arg4: memref<32x32xf32, #tpu.memory_space<vmem>>, %arg5: memref<32x1xf32, #tpu.memory_space<vmem>>, %arg6: memref<4x32xf32, #tpu.memory_space<vmem>>, %arg7: memref<4x1xf32, #tpu.memory_space<vmem>>, %arg8: memref<4x128xf32, #tpu.memory_space<vmem>>) attributes {dimension_semantics = [#tpu.dimension_semantics<parallel>], iteration_bounds = array<i64: 1>, scalar_prefetch = 0 : i64, scratch_operands = 0 : i64, tpu.core_type = #tpu.core_type<tc>, window_params = [{transform_indices = @transform_0, window_bounds = array<i64: 20, 128>}, {pipeline_mode = #tpu.pipeline_mode<synchronous>, transform_indices = @transform_1, window_bounds = array<i64: 32, 20>}, {pipeline_mode = #tpu.pipeline_mode<synchronous>, transform_indices = @transform_2, window_bounds = array<i64: 32, 1>}, {pipeline_mode = #tpu.pipeline_mode<synchronous>, transform_indices = @transform_3, window_bounds = array<i64: 32, 32>}, {pipeline_mode = #tpu.pipeline_mode<synchronous>, transform_indices = @transform_4, window_bounds = array<i64: 32, 1>}, {pipeline_mode = #tpu.pipeline_mode<synchronous>, transform_indices = @transform_5, window_bounds = array<i64: 4, 32>}, {pipeline_mode = #tpu.pipeline_mode<synchronous>, transform_indices = @transform_6, window_bounds = array<i64: 4, 1>}, {transform_indices = @transform_7, window_bounds = array<i64: 4, 128>}]} {
    %c0 = arith.constant 0 : index
    %c0_0 = arith.constant 0 : index
    %0 = vector.load %arg1[%c0, %c0_0] : memref<20x128xf32, #tpu.memory_space<vmem>>, vector<20x128xf32>
    %c0_1 = arith.constant 0 : index
    %c0_2 = arith.constant 0 : index
    %1 = vector.load %arg2[%c0_1, %c0_2] : memref<32x20xf32, #tpu.memory_space<vmem>>, vector<32x20xf32>
    %cst = arith.constant dense<0.000000e+00> : vector<32x128xf32>
    %2 = tpu.matmul %1, %0, %cst {dimension_numbers = #tpu.dot_dimension_numbers<[1], [0], [0], [1], [0, 0, 1, 1], [], []>} : vector<32x20xf32>, vector<20x128xf32>, vector<32x128xf32> -> vector<32x128xf32>
    %c0_3 = arith.constant 0 : index
    %c0_4 = arith.constant 0 : index
    %3 = vector.load %arg3[%c0_3, %c0_4] : memref<32x1xf32, #tpu.memory_space<vmem>>, vector<32x1xf32>
    %4 = vector.broadcast %3 : vector<32x1xf32> to vector<32x128xf32>
    %5 = arith.addf %2, %4 : vector<32x128xf32>
    %c0_5 = arith.constant 0 : index
    %c0_6 = arith.constant 0 : index
    %6 = vector.load %arg4[%c0_5, %c0_6] : memref<32x32xf32, #tpu.memory_space<vmem>>, vector<32x32xf32>
    %cst_7 = arith.constant dense<0.000000e+00> : vector<32x128xf32>
    %7 = tpu.matmul %6, %5, %cst_7 {dimension_numbers = #tpu.dot_dimension_numbers<[1], [0], [0], [1], [0, 0, 1, 1], [], []>} : vector<32x32xf32>, vector<32x128xf32>, vector<32x128xf32> -> vector<32x128xf32>
    %c0_8 = arith.constant 0 : index
    %c0_9 = arith.constant 0 : index
    %8 = vector.load %arg5[%c0_8, %c0_9] : memref<32x1xf32, #tpu.memory_space<vmem>>, vector<32x1xf32>
    %9 = vector.broadcast %8 : vector<32x1xf32> to vector<32x128xf32>
    %10 = arith.addf %7, %9 : vector<32x128xf32>
    %cst_10 = arith.constant 0.000000e+00 : f32
    %11 = vector.broadcast %cst_10 : f32 to vector<32x128xf32>
    %12 = arith.maximumf %10, %11 : vector<32x128xf32>
    %13 = arith.addf %5, %12 : vector<32x128xf32>
    %cst_11 = arith.constant 0.000000e+00 : f32
    %14 = vector.broadcast %cst_11 : f32 to vector<32x128xf32>
    %15 = arith.maximumf %13, %14 : vector<32x128xf32>
    %c0_12 = arith.constant 0 : index
    %c0_13 = arith.constant 0 : index
    %16 = vector.load %arg6[%c0_12, %c0_13] : memref<4x32xf32, #tpu.memory_space<vmem>>, vector<4x32xf32>
    %cst_14 = arith.constant dense<0.000000e+00> : vector<4x128xf32>
    %17 = tpu.matmul %16, %15, %cst_14 {dimension_numbers = #tpu.dot_dimension_numbers<[1], [0], [0], [1], [0, 0, 1, 1], [], []>} : vector<4x32xf32>, vector<32x128xf32>, vector<4x128xf32> -> vector<4x128xf32>
    %c0_15 = arith.constant 0 : index
    %c0_16 = arith.constant 0 : index
    %18 = vector.load %arg7[%c0_15, %c0_16] : memref<4x1xf32, #tpu.memory_space<vmem>>, vector<4x1xf32>
    %19 = vector.broadcast %18 : vector<4x1xf32> to vector<4x128xf32>
    %20 = arith.addf %17, %19 : vector<4x128xf32>
    %c0_17 = arith.constant 0 : index
    %c0_18 = arith.constant 0 : index
    %21 = vector.load %arg8[%c0_17, %c0_18] : memref<4x128xf32, #tpu.memory_space<vmem>>, vector<4x128xf32>
    tpu.vector_store %arg8[%c0_17, %c0_18], %20 {strides = array<i32>} : memref<4x128xf32, #tpu.memory_space<vmem>>, vector<4x128xf32>,
    return
  }
  func.func @transform_0(%arg0: i32) -> (i32, i32) {
    %c0_i32 = arith.constant 0 : i32
    %c0_i32_0 = arith.constant 0 : i32
    return %c0_i32, %arg0 : i32, i32
  }
  func.func @transform_1(%arg0: i32) -> (i32, i32) {
    %c0_i32 = arith.constant 0 : i32
    %c0_i32_0 = arith.constant 0 : i32
    %c0_i32_1 = arith.constant 0 : i32
    return %c0_i32, %c0_i32_0 : i32, i32
  }
  func.func @transform_2(%arg0: i32) -> (i32, i32) {
    %c0_i32 = arith.constant 0 : i32
    %c0_i32_0 = arith.constant 0 : i32
    %c0_i32_1 = arith.constant 0 : i32
    return %c0_i32, %c0_i32_0 : i32, i32
  }
  func.func @transform_3(%arg0: i32) -> (i32, i32) {
    %c0_i32 = arith.constant 0 : i32
    %c0_i32_0 = arith.constant 0 : i32
    %c0_i32_1 = arith.constant 0 : i32
    return %c0_i32, %c0_i32_0 : i32, i32
  }
  func.func @transform_4(%arg0: i32) -> (i32, i32) {
    %c0_i32 = arith.constant 0 : i32
    %c0_i32_0 = arith.constant 0 : i32
    %c0_i32_1 = arith.constant 0 : i32
    return %c0_i32, %c0_i32_0 : i32, i32
  }
  func.func @transform_5(%arg0: i32) -> (i32, i32) {
    %c0_i32 = arith.constant 0 : i32
    %c0_i32_0 = arith.constant 0 : i32
    %c0_i32_1 = arith.constant 0 : i32
    return %c0_i32, %c0_i32_0 : i32, i32
  }
  func.func @transform_6(%arg0: i32) -> (i32, i32) {
    %c0_i32 = arith.constant 0 : i32
    %c0_i32_0 = arith.constant 0 : i32
    %c0_i32_1 = arith.constant 0 : i32
    return %c0_i32, %c0_i32_0 : i32, i32
  }
  func.func @transform_7(%arg0: i32) -> (i32, i32) {
    %c0_i32 = arith.constant 0 : i32
    %c0_i32_0 = arith.constant 0 : i32
    return %c0_i32, %arg0 : i32, i32
  }
}

</mosaic_0001>

<bundles_post_ra>
// kernel: offset_predictor.1
= control target key start
LH: loop header
LB: loop body
LE: loop exit
PB: predicated region body
PF: predicated region fallthrough
CT: control target
= control target key end

     0   :  { %vm70_vm0 = vcmask 1043456   ;;  %vm57_vm1 = vcmask 162816   ;;  %v454_v2 = vmov 0   ;;  %vm187_vm2 = vcmask 261120   ;;  %s572_s0 = inlined_call_operand.vmem [shape: f32[20,128], index: 0, kind: input, shape index: {}]   ;;  %s573_s1 = inlined_call_operand.vmem [shape: f32[32,20], index: 1, kind: input, shape index: {}]   ;;  %s574_s2 = inlined_call_operand.vmem [shape: f32[32,1], index: 2, kind: input, shape index: {}]   ;;  %s575_s4 = inlined_call_operand.vmem [shape: f32[32,1], index: 4, kind: input, shape index: {}]   ;;  %s576_s6 = inlined_call_operand.vmem [shape: f32[4,1], index: 6, kind: input, shape index: {}]   ;;  %s577_s3 = inlined_call_operand.vmem [shape: f32[32,32], index: 3, kind: input, shape index: {}]   ;;  %s578_s5 = inlined_call_operand.vmem [shape: f32[4,32], index: 5, kind: input, shape index: {}]   ;;  %s579_s7 = inlined_call_operand.vmem [shape: f32[4,128], index: 7, kind: output, shape index: {}]  }
   0x1   :  { %v28_v0 = vld [vmem:[%s572_s0 + $0x10] sm:$0xf]  ;;  %v27_v1 = vld [vmem:[%s572_s0 + $0x8] sm:$0xff]  ;;  %452 = vset.pattern.permute.xlu0 %v454_v2  ;;  %453 = vset.pattern.permute.xlu1 %v454_v2  ;;  %v29_v3 = vld [vmem:[%s573_s1] sm:$0xff]  ;;  %v455_v33 = vmov 0.0   ;;  %vm456_vm3 = vmmov 0  }
   0x2   :  { %412 = vmatprep.subr.msk.mxu0 %vm70_vm0, %v28_v0  ;;  %v26_v4 = vld [vmem:[%s572_s0] sm:$0xff]  ;;  %418 = vmatprep.mubr.msk.f32.mxu0 %vm57_vm1, %v29_v3  ;;  %v36_v5 = vld [vmem:[%s574_s2 + $0x18] sm:$0xff]  ;;  %v34_v6 = vld [vmem:[%s574_s2 + $0x8] sm:$0xff] }
   0x3   :  { %413 = vmatpush3.msk.msra.mxu0 %vm70_vm0, %v28_v0  ;;  %54 = vperm.xlu0 %452, %v36_v5   ;;  %v30_v7 = vld [vmem:[%s573_s1 + $0x8] sm:$0xff]  ;;  %v35_v8 = vld [vmem:[%s574_s2 + $0x10] sm:$0xff]  ;;  %v33_v10 = vld [vmem:[%s574_s2] sm:$0xff] }
   0x4   :  { %414 = vmatprep.subr.mxu0 %v27_v1  ;;  %44 = vperm.xlu1 %453, %v34_v6   ;;  %v31_v9 = vld [vmem:[%s573_s1 + $0x10] sm:$0xff]  ;;  %v32_v11 = vld [vmem:[%s573_s1 + $0x18] sm:$0xff]  ;;  %v164_v14 = vld [vmem:[%s575_s4 + $0x8] sm:$0xff] }
   0x5   :  { %415 = vmatpush3.msra.mxu0 %v27_v1  ;;  %v166_v12 = vld [vmem:[%s575_s4 + $0x18] sm:$0xff]  ;;  %v165_v13 = vld [vmem:[%s575_s4 + $0x10] sm:$0xff]  ;;  %v163_v15 = vld [vmem:[%s575_s4] sm:$0xff] }
   0x6   :  { %416 = vmatprep.subr.mxu0 %v26_v4  ;;  %v298_v16 = vld [vmem:[%s576_s6] sm:$0xf]  ;;  %v160_v30 = vld [vmem:[%s577_s3 + $0x8] sm:$0xff]  ;;  %v161_v31 = vld [vmem:[%s577_s3 + $0x10] sm:$0xff] }
   0x7   :  { %417 = vmatpush3.msra.mxu0 %v26_v4  ;;  %49 = vperm.xlu0 %452, %v35_v8   ;;  %v159_v17 = vld [vmem:[%s577_s3] sm:$0xff]  ;;  %v162_v32 = vld [vmem:[%s577_s3 + $0x18] sm:$0xff] }
   0x8   :  { %419 = vmatmul.mubr.msk.f32.vlgmr.msra.gmra.mxu0 %vm57_vm1, %v30_v7  ;;  %39 = vperm.xlu1 %453, %v33_v10   ;;  %v297_v58 = vld [vmem:[%s578_s5] sm:$0xf] }
   0x9   :  { %421 = vmatprep.mubr.msk.f32.mxu0 %vm57_vm1, %v31_v9  ;;  %432 = vmatprep.mubr.msk.f32.mxu1 %vm187_vm2, %v159_v17 }
   0xa   :  { %438 = vmatprep.subr.mxu0 %v455_v33 }
   0xb   :  { %184 = vperm.xlu0 %452, %v166_v12  }
   0xc   :  { %422 = vmatmul.mubr.msk.f32.gmra.mxu0 %vm57_vm1, %v32_v11  ;;  %179 = vperm.xlu1 %453, %v165_v13  }
   0xd   :  { %446 = vmatprep.mubr.msk.f32.mxu0 %vm456_vm3, %v455_v33 }
   0xf   :  { %174 = vperm.xlu0 %452, %v164_v14  }
  0x10   :  { %169 = vperm.xlu1 %453, %v163_v15  }
  0x13   :  { %301 = vperm.xlu0 %452, %v298_v16  }
  0x7e   :  { %v55_v18 = vpop.permute.xlu0 %54 }
  0x7f   :  { %v45_v21 = vpop.permute.xlu1 %44 }
  0x82   :  { %v50_v24 = vpop.permute.xlu0 %49 }
  0x83   :  { %v40_v28 = vpop.permute.xlu1 %39 }
  0x86   :  { %v185_v34 = vpop.permute.xlu0 %184 }
  0x87   :  { %v180_v35 = vpop.permute.xlu1 %179 }
  0x8a   :  { %v175_v37 = vpop.permute.xlu0 %174 }
  0x8b   :  { %v170_v40 = vpop.permute.xlu1 %169 }
  0x8e   :  { %v302_v59 = vpop.permute.xlu0 %301 }
  0xc8   :  { %v420_v19 = vpop.f32.mrf.mxu0 }
  0xc9   :  { %v146_v27 = vadd.f32 %v420_v19, %v45_v21 }
  0xca   :  { %v140_v20 = vpop.f32.mrf.mxu0 }
  0xcb   :  { %v141_v29 = vadd.f32 %v140_v20, %v40_v28 }
  0xcc   :  { %v423_v22 = vpop.f32.mrf.mxu0 }
  0xcd   :  { %v156_v23 = vadd.f32 %v423_v22, %v55_v18 }
  0xce   :  { %v150_v25 = vpop.f32.mrf.mxu0 }
  0xcf   :  { %v151_v26 = vadd.f32 %v150_v25, %v50_v24  ;;  %424 = vmatprep.subr.mxu1 %v156_v23 }
  0xd0   :  { %425 = vmatpush3.msra.mxu1 %v156_v23 }
  0xd1   :  { %426 = vmatprep.subr.mxu1 %v151_v26 }
  0xd2   :  { %427 = vmatpush3.msra.mxu1 %v151_v26 }
  0xd3   :  { %428 = vmatprep.subr.mxu1 %v146_v27 }
  0xd4   :  { %429 = vmatpush3.msra.mxu1 %v146_v27 }
  0xd5   :  { %430 = vmatprep.subr.mxu1 %v141_v29 }
  0xd6   :  { %431 = vmatpush3.msra.mxu1 %v141_v29 }
  0xd7   :  { %433 = vmatmul.mubr.msk.f32.vlgmr.msra.gmra.mxu1 %vm187_vm2, %v160_v30 }
  0xd8   :  { %435 = vmatprep.mubr.msk.f32.mxu1 %vm187_vm2, %v161_v31 }
  0xdb   :  { %436 = vmatmul.mubr.msk.f32.gmra.mxu1 %vm187_vm2, %v162_v32 }
 0x197   :  { %v434_v36 = vpop.f32.mrf.mxu1 }
 0x198   :  { %v272_v39 = vadd.f32 %v434_v36, %v175_v37 }
 0x199   :  { %v266_v38 = vpop.f32.mrf.mxu1 }
 0x19a   :  { %v267_v42 = vadd.f32 %v266_v38, %v170_v40  ;;  %v286_v45 = vmax.f32 %v272_v39, 0.0 }
 0x19b   :  { %v437_v41 = vpop.f32.mrf.mxu1 }
 0x19c   :  { %v282_v43 = vadd.f32 %v437_v41, %v185_v34  ;;  %v285_v48 = vmax.f32 %v267_v42, 0.0  ;;  %v290_v51 = vadd.f32 %v286_v45, %v146_v27 }
 0x19d   :  { %v276_v44 = vpop.f32.mrf.mxu1 }
 0x19e   :  { %v288_v46 = vmax.f32 %v282_v43, 0.0  ;;  %v277_v47 = vadd.f32 %v276_v44, %v180_v35  ;;  %v289_v54 = vadd.f32 %v285_v48, %v141_v29  ;;  %v294_v56 = vmax.f32 %v290_v51, 0.0 }
 0x1a0   :  { %v292_v49 = vadd.f32 %v288_v46, %v156_v23  ;;  %v287_v50 = vmax.f32 %v277_v47, 0.0  ;;  %v293_v57 = vmax.f32 %v289_v54, 0.0 }
 0x1a2   :  { %v296_v52 = vmax.f32 %v292_v49, 0.0  ;;  %v291_v53 = vadd.f32 %v287_v50, %v151_v26 }
 0x1a4   :  { %v295_v55 = vmax.f32 %v291_v53, 0.0  ;;  %439 = vmatpush3.msra.mxu0 %v296_v52 }
 0x1a5   :  { %440 = vmatprep.subr.mxu0 %v455_v33 }
 0x1a6   :  { %441 = vmatpush3.msra.mxu0 %v295_v55 }
 0x1a7   :  { %442 = vmatprep.subr.mxu0 %v455_v33 }
 0x1a8   :  { %443 = vmatpush3.msra.mxu0 %v294_v56 }
 0x1a9   :  { %444 = vmatprep.subr.mxu0 %v455_v33 }
 0x1aa   :  { %445 = vmatpush3.msra.mxu0 %v293_v57 }
 0x1ab   :  { %447 = vmatmul.mubr.msk.f32.vlgmr.msra.gmra.mxu0 %vm187_vm2, %v297_v58 }
 0x26b   :  { %v373_v60 = vpop.f32.mrf.mxu0 }
 0x26c   :  { %v374_v61 = vadd.f32 %v373_v60, %v302_v59 }
 0x26d   :  { %v448_v62 = vpop.f32.mrf.mxu0 }
 0x26e   :  { %377 = vst [vmem:[%s579_s7] sm:$0xf] %v374_v61 }

</bundles_post_ra>
